<compile_context>
chip_gen: v7x
topology: tpu7x:2x2x1
jax: 0.10.0
libtpu: 0.0.40
codegen_flags: <defaults>
</compile_context>

<pallas_src>
import jax
import jax.numpy as jnp
from jax.experimental import pallas as pl
from jax.experimental.pallas import tpu as pltpu


_VMEM_LIMIT_BYTES = 32 * 1024 * 1024   # safe on v5e (128 MiB phys) and v7x (64 MiB phys)
_MIN_GRID_STEPS = 4                    # target at least ~4 pipeline steps when possible


def _make_kernel(compute_dtype):
    def kernel(gamma_ref, beta_ref, x_ref, o_ref):
        # gamma_ref: SMEM (2,) f32, beta_ref: SMEM (1,) f32, x_ref/o_ref: VMEM tile.
        scale_x = (1.0 - gamma_ref[0]).astype(compute_dtype)
        scale_t = gamma_ref[1].astype(compute_dtype)
        bias = beta_ref[0].astype(compute_dtype)
        x = x_ref[...].astype(compute_dtype)
        y = x * scale_x + jnp.tanh(x) * scale_t + bias
        o_ref[...] = y.astype(o_ref.dtype)
    return kernel


def _plain(x, gamma32, beta32):
    """Fused plain-JAX path (single HBM pass) for non-128-divisible sizes."""
    xf = x.astype(jnp.float32)
    y = xf * (1.0 - gamma32[0]) + jnp.tanh(xf) * gamma32[1] + beta32[0]
    return y.astype(x.dtype)


def _run_slab(x2d, gamma32, beta32, block_rows, compute_dtype):
    """Single pallas_call over a (rows, cols) slab; partial last block is masked."""
    rows, cols = x2d.shape
    grid = (pl.cdiv(rows, block_rows),)
    n = rows * cols
    itemsize = jnp.dtype(x2d.dtype).itemsize
    return pl.pallas_call(
        _make_kernel(compute_dtype),
        out_shape=jax.ShapeDtypeStruct((rows, cols), x2d.dtype),
        grid_spec=pltpu.PrefetchScalarGridSpec(
            num_scalar_prefetch=0,
            grid=grid,
            in_specs=[
                pl.BlockSpec(memory_space=pltpu.MemorySpace.SMEM),  # gamma (2,) f32
                pl.BlockSpec(memory_space=pltpu.MemorySpace.SMEM),  # beta  (1,) f32
                pl.BlockSpec((block_rows, cols), lambda i: (i, 0)),
            ],
            out_specs=pl.BlockSpec((block_rows, cols), lambda i: (i, 0)),
        ),
        compiler_params=pltpu.CompilerParams(
            dimension_semantics=("parallel",),
            vmem_limit_bytes=_VMEM_LIMIT_BYTES,
        ),
        cost_estimate=pl.CostEstimate(
            flops=5 * n,
            transcendentals=n,
            bytes_accessed=2 * n * itemsize,
        ),
    )(gamma32, beta32, x2d)


def _choose_cols(total, sublane):
    """Largest lane-dense column count (multiple of 128) that divides total,
    preferring one that also makes the row count sublane-aligned."""
    for cand in (2048, 1024, 512, 256, 128):
        if total % cand == 0 and (total // cand) % sublane == 0:
            return cand
    for cand in (2048, 1024, 512, 256, 128):
        if total % cand == 0:
            return cand
    return 0


def parametric_tanh(x, gamma, beta, *,
                    target_block_bytes=6 << 20,
                    compute_in_float32=True):
    """ParametricTanh forward: x*(1-gamma[0]) + tanh(x)*gamma[1] + beta.

    x: any shape / dtype. gamma: (2,). beta: (1,) or scalar.  Params are kept
    as exact float32 SMEM scalars.  Math runs in float32 by default; set
    compute_in_float32=False to compute bf16/fp16 inputs in their native dtype
    (slightly different numerics, relieves VALU pressure on v7x).
    """
    orig_shape = x.shape
    dtype = x.dtype
    total = int(x.size)
    gamma32 = jnp.asarray(gamma, jnp.float32).reshape(2)
    beta32 = jnp.asarray(beta, jnp.float32).reshape(1)

    if total == 0:
        return x

    itemsize = jnp.dtype(dtype).itemsize
    sublane = max(8, 32 // itemsize)  # 8 (32-bit), 16 (16-bit), 32 (8-bit)

    if compute_in_float32 or dtype not in (jnp.bfloat16, jnp.float16):
        compute_dtype = jnp.float32
    else:
        compute_dtype = dtype

    cols = _choose_cols(total, sublane)
    if cols == 0:
        # Total element count not a multiple of 128 (no lane-dense 2-D view
        # without a pad/copy).  A single fused XLA elementwise pass is already
        # one HBM read + one write (roofline), so use it instead of the old
        # slice + tail-kernel + concatenate path (~2x traffic).
        # TODO(synk): replace with a masked 1-D Pallas formulation
        # (block multiple of 128, cdiv grid) to keep everything in-kernel.
        return _plain(x, gamma32, beta32)

    rows = total // cols
    x2d = x.reshape(rows, cols)

    row_bytes = cols * itemsize
    # ~target_block_bytes per block, rows a multiple of the packed sublane count.
    rows_from_bytes = max(sublane, (target_block_bytes // row_bytes) // sublane * sublane)
    if rows < sublane:
        block_rows = rows                       # full-dim block (always legal)
    else:
        # Also cap so that the grid has >= ~_MIN_GRID_STEPS steps: keeps
        # DMA/compute overlap and lets megacore split medium inputs.
        rows_for_steps = max(sublane,
                             (pl.cdiv(rows, _MIN_GRID_STEPS) // sublane) * sublane)
        block_rows = min(rows_from_bytes, rows_for_steps)

    out2d = _run_slab(x2d, gamma32, beta32, block_rows, compute_dtype)
    return out2d.reshape(orig_shape)


def init_parametric_tanh_params(key, std=0.01, use_beta=True, dtype=jnp.float32):
    """Deterministic init mirroring the PyTorch __init__ (normal draws)."""
    kb, kg = jax.random.split(key)
    beta = jax.random.normal(kb, (1,), dtype=dtype) * std + 0.0
    gamma = jax.random.normal(kg, (2,), dtype=dtype) * std + 0.5
    if not use_beta:
        beta = jnp.zeros((1,), dtype=dtype)
    return gamma, beta


def _reference(x, gamma, beta):
    xf = x.astype(jnp.float32)
    y = xf * (1.0 - gamma[0]) + jnp.tanh(xf) * gamma[1] + beta[0]
    return y.astype(x.dtype)


if __name__ == "__main__":
    key = jax.random.PRNGKey(0)
    kx, kp, kx2, kx3, kx4 = jax.random.split(key, 5)

    gamma, beta = init_parametric_tanh_params(kp, std=0.01, use_beta=True)

    # Primary check: small NCHW input consistent with typical usage.
    x = jax.random.normal(kx, (2, 4, 16, 16), dtype=jnp.float32)
    out = jax.block_until_ready(parametric_tanh(x, gamma, beta))
    ref = _reference(x, gamma, beta)
    assert out.shape == x.shape
    assert jnp.allclose(out, ref, atol=1e-5, rtol=1e-5)

    # Multi-block check (grid > 1, exercises the masked/pipelined tiled path).
    x_big = jax.random.normal(kx2, (8, 16, 64, 64), dtype=jnp.float32)
    out_big = jax.block_until_ready(parametric_tanh(x_big, gamma, beta))
    assert jnp.allclose(out_big, _reference(x_big, gamma, beta), atol=1e-5, rtol=1e-5)

    # Non-128-divisible size check (fused fallback path).
    x_odd = jax.random.normal(kx3, (3, 5, 7, 11), dtype=jnp.float32)
    out_odd = jax.block_until_ready(parametric_tanh(x_odd, gamma, beta))
    assert jnp.allclose(out_odd, _reference(x_odd, gamma, beta), atol=1e-5, rtol=1e-5)

    # bf16 input with default f32 compute (exact-params path).
    x_bf16 = jax.random.normal(kx4, (2, 4, 16, 16), dtype=jnp.bfloat16)
    out_bf16 = jax.block_until_ready(parametric_tanh(x_bf16, gamma, beta))
    assert jnp.allclose(out_bf16.astype(jnp.float32),
                        _reference(x_bf16, gamma, beta).astype(jnp.float32),
                        atol=1e-2, rtol=1e-2)

    print("KERNEL_OK")
</pallas_src>

<mosaic_0001>
module attributes {stable_mosaic.version = 11 : i64} {
  func.func @kernel(%arg0: i32, %arg1: memref<2xf32, #tpu.memory_space<smem>>, %arg2: memref<1xf32, #tpu.memory_space<smem>>, %arg3: memref<8x256xf32, #tpu.memory_space<vmem>>, %arg4: memref<8x256xf32, #tpu.memory_space<vmem>>) attributes {dimension_semantics = [#tpu.dimension_semantics<parallel>], iteration_bounds = array<i64: 1>, scalar_prefetch = 0 : i64, scratch_operands = 0 : i64, tpu.core_type = #tpu.core_type<tc>, window_params = [{transform_indices = @transform_0, window_bounds = array<i64: 2>}, {transform_indices = @transform_1, window_bounds = array<i64: 1>}, {transform_indices = @transform_2, window_bounds = array<i64: 8, 256>}, {transform_indices = @transform_3, window_bounds = array<i64: 8, 256>}]} {
    %c0 = arith.constant 0 : index
    %0 = memref.load %arg1[%c0] : memref<2xf32, #tpu.memory_space<smem>>
    %cst = arith.constant 1.000000e+00 : f32
    %1 = arith.subf %cst, %0 : f32
    %c1 = arith.constant 1 : index
    %2 = memref.load %arg1[%c1] : memref<2xf32, #tpu.memory_space<smem>>
    %c0_0 = arith.constant 0 : index
    %3 = memref.load %arg2[%c0_0] : memref<1xf32, #tpu.memory_space<smem>>
    %c0_1 = arith.constant 0 : index
    %c0_2 = arith.constant 0 : index
    %4 = vector.load %arg3[%c0_1, %c0_2] : memref<8x256xf32, #tpu.memory_space<vmem>>, vector<8x256xf32>
    %5 = vector.broadcast %1 : f32 to vector<8x256xf32>
    %6 = arith.mulf %4, %5 : vector<8x256xf32>
    %7 = math.tanh %4 : vector<8x256xf32>
    %8 = vector.broadcast %2 : f32 to vector<8x256xf32>
    %9 = arith.mulf %7, %8 : vector<8x256xf32>
    %10 = arith.addf %6, %9 : vector<8x256xf32>
    %11 = vector.broadcast %3 : f32 to vector<8x256xf32>
    %12 = arith.addf %10, %11 : vector<8x256xf32>
    %c0_3 = arith.constant 0 : index
    %c0_4 = arith.constant 0 : index
    %13 = vector.load %arg4[%c0_3, %c0_4] : memref<8x256xf32, #tpu.memory_space<vmem>>, vector<8x256xf32>
    tpu.vector_store %arg4[%c0_3, %c0_4], %12 {strides = array<i32>} : memref<8x256xf32, #tpu.memory_space<vmem>>, vector<8x256xf32>,
    return
  }
  func.func @transform_0(%arg0: i32) -> i32 {
    %c0_i32 = arith.constant 0 : i32
    %c0_i32_0 = arith.constant 0 : i32
    return %c0_i32 : i32
  }
  func.func @transform_1(%arg0: i32) -> i32 {
    %c0_i32 = arith.constant 0 : i32
    %c0_i32_0 = arith.constant 0 : i32
    return %c0_i32 : i32
  }
  func.func @transform_2(%arg0: i32) -> (i32, i32) {
    %c0_i32 = arith.constant 0 : i32
    %c0_i32_0 = arith.constant 0 : i32
    return %arg0, %c0_i32 : i32, i32
  }
  func.func @transform_3(%arg0: i32) -> (i32, i32) {
    %c0_i32 = arith.constant 0 : i32
    %c0_i32_0 = arith.constant 0 : i32
    return %arg0, %c0_i32 : i32, i32
  }
}

</mosaic_0001>

<bundles_post_ra>
// kernel: tpu_custom_call.1
= control target key start
LH: loop header
LB: loop body
LE: loop exit
PB: predicated region body
PF: predicated region fallthrough
CT: control target
= control target key end

     0   :  { %9 = vsyncpa [#allocation6], 0  ;;  %s201_s0 = inlined_call_operand.vmem [shape: f32[2], index: 0, kind: input, shape index: {}]   ;;  %s202_s1 = inlined_call_operand.<no memory space> [shape: f32[1], index: 1, kind: input, shape index: {}]   ;;  %s203_s2 = inlined_call_operand.hbm [shape: f32[8,256], index: 2, kind: input, shape index: {}]   ;;  %s204_s3 = inlined_call_operand.hbm [shape: f32[8,256], index: 3, kind: output, shape index: {}]  }
   0x1   :  { %10 = vsyncpa [#allocation4], 0 }
   0x2   :  { %11 = vsyncpa [#allocation5], 0  ;;  %s18_s14 = sshll.u32 %s201_s0, 4  ;;  %s19_s14 = int_to_ptr.vmem [resolvable:$true] %s18_s14 }
   0x3   :  { %s86_s15 = scalar_lea.vmem %s19_s14, 16  ;;  %p91_p1 = scmp.lt.s32.totalorder %s19_s14, %s19_s14 }
   0x4   :  { %p87_p0 = scmp.ne.s32.totalorder %s19_s14, %s86_s15  ;;  %p92_p2 = scmp.lt.s32.totalorder %s86_s15, %s86_s15 }
   0x6   :  { %p93_p3 = por %p92_p2, %p91_p1 }
   0x8   :  { %p94_p4 = pnand %p93_p3, %p87_p0 }
   0xa   :  { %97 = shalt.err (!%p94_p4)
}
   0xb   :  { %s148_s16 = smov [#allocation3]   ;;  %s149_s17 = smov [#allocation7]  }
   0xc   :  { %21 = dma.vmem_to_smem %s19_s14, 16, %s148_s16, [#allocation6]  }
   0xd   :  { %s30_s18 = sshll.u32 %s149_s17, 4  ;;  %s98_s21 = scalar_lea.hbm %s203_s2, 256  ;;  %s31_s18 = int_to_ptr.vmem [resolvable:$true] %s30_s18 }
   0xe   :  { %p99_p5 = scmp.ne.s32.totalorder %s203_s2, %s98_s21  ;;  %p102_p6 = scmp.lt.u32.totalorder %s98_s21, %s203_s2 }
  0x10   :  { %p104_p7 = pnand %p102_p6, %p99_p5 }
  0x12   :  { %107 = shalt.err (!%p104_p7)
}
  0x13   :  { %s108_s25 = scalar_lea.vmem %s31_s18, 256  ;;  %p113_p9 = scmp.lt.s32.totalorder %s31_s18, %s31_s18 }
  0x14   :  { %p109_p8 = scmp.ne.s32.totalorder %s31_s18, %s108_s25  ;;  %p114_p10 = scmp.lt.s32.totalorder %s108_s25, %s108_s25 }
  0x16   :  { %p115_p11 = por %p114_p10, %p113_p9 }
  0x18   :  { %p116_p12 = pnand %p115_p11, %p109_p8 }
  0x1a   :  { %119 = shalt.err (!%p116_p12)
}
  0x1b   :  { %33 = dma.hbm_to_vmem [thread:$0]  %s203_s2, 256, %s31_s18, [#allocation4]  }
  0x1c   :  { %142 = dma.done.wait [#allocation6], 16  }
  0x1d   :  { %143 = vsyncadd [#allocation6], 4294967280 }
  0x1e   :  { %144 = dma.done.wait [#allocation4], 256  }
  0x1f   :  { %145 = vsyncadd [#allocation4], 4294967040 }
  0x20   :  { %40 = sfence }
  0x21   :  { %s41_s28 = sld [smem:[#allocation3]]  ;;  %v45_v0 = vld [vmem:[#allocation7] sm:$0xff]  ;;  %v46_v1 = vld [vmem:[#allocation7 + $0x8] sm:$0xff]  ;;  %s78_s29 = sld [smem:[#allocation3 + $0x1]]  ;;  %v57_v9 = vstv %s202_s1 }
  0x22   :  { %82 = vtanh.f32 %v45_v0  ;;  %s150_s5 = smov [#allocation8]  }
  0x23   :  { %84 = vtanh.f32 %v46_v1  ;;  %s68_s6 = sshll.u32 %s150_s5, 4  ;;  %s69_s6 = int_to_ptr.vmem [resolvable:$true] %s68_s6 }
  0x24   :  { %s120_s7 = scalar_lea.vmem %s69_s6, 256  ;;  %p125_p0 = scmp.lt.s32.totalorder %s69_s6, %s69_s6 }
  0x25   :  { %p121_p13 = scmp.ne.s32.totalorder %s69_s6, %s120_s7  ;;  %p126_p1 = scmp.lt.s32.totalorder %s120_s7, %s120_s7 }
  0x27   :  { %s42_s30 = ssub.f32 1.0, %s41_s28  ;;  %v52_v3 = vstv %s78_s29  ;;  %p127_p2 = por %p126_p1, %p125_p0 }
  0x29   :  { %v47_v2 = vstv %s42_s30  ;;  %p128_p3 = pnand %p127_p2, %p121_p13 }
  0x2a   :  { %v48_v4 = vmul.f32 %v47_v2, %v45_v0  ;;  %v49_v6 = vmul.f32 %v47_v2, %v46_v1 }
  0x2c   :  { %v83_v5 = vpop.eup %82 }
  0x2d   :  { %v85_v7 = vpop.eup %84  ;;  %v53_v8 = vmul.f32 %v83_v5, %v52_v3 }
  0x2e   :  { %v54_v10 = vmul.f32 %v85_v7, %v52_v3 }
  0x2f   :  { %v55_v11 = vadd.f32 %v53_v8, %v48_v4 }
  0x30   :  { %v56_v12 = vadd.f32 %v54_v10, %v49_v6 }
  0x31   :  { %v58_v13 = vadd.f32 %v57_v9, %v55_v11 }
  0x32   :  { %v59_v14 = vadd.f32 %v57_v9, %v56_v12 }
  0x33   :  { %60 = vst [vmem:[#allocation8] sm:$0xff] %v58_v13 }
  0x34   :  { %61 = vst [vmem:[#allocation8 + $0x8] sm:$0xff] %v59_v14 }
  0x35   :  { %131 = shalt.err (!%p128_p3)
}
  0x36   :  { %s132_s1 = scalar_lea.hbm %s204_s3, 256 }
  0x37   :  { %p133_p4 = scmp.ne.s32.totalorder %s204_s3, %s132_s1  ;;  %p136_p5 = scmp.lt.u32.totalorder %s132_s1, %s204_s3 }
  0x39   :  { %p138_p6 = pnand %p136_p5, %p133_p4 }
  0x3b   :  { %141 = shalt.err (!%p138_p6)
}
  0x3c   :  { %71 = dma.vmem_to_hbm [thread:$0]  %s69_s6, 256, %s204_s3, [#allocation5]  }
  0x3d   :  { %146 = dma.done.wait [#allocation5], 256  }
  0x3e   :  { %147 = vsyncadd [#allocation5], 4294967040 }
  0x3f   :  { %75 = vsyncpa [#allocation4], 1 }
  0x40   :  { %76 = vsyncpa [#allocation5], 1 }
  0x41   :  { %77 = vsyncpa [#allocation6], 1 }

</bundles_post_ra>
